<compile_context>
chip_gen: v5e
topology: v5e:2x2
jax: 0.10.0
libtpu: 0.0.40
codegen_flags: <defaults>
</compile_context>

<pallas_src>
import functools

import jax
import jax.numpy as jnp
from jax import lax
from jax.experimental import pallas as pl
from jax.experimental.pallas import tpu as pltpu


# ---------------------------------------------------------------------------
# VMEM budgets (generation aware, conservative fallback).
# ---------------------------------------------------------------------------
def _detect_vmem_capacity_bytes():
    try:
        return int(pltpu.get_tpu_info().vmem_capacity_bytes)
    except Exception:
        return 64 << 20                       # v7x-sized conservative fallback


_VMEM_PHYS = _detect_vmem_capacity_bytes()
# Total scoped VMEM we are willing to spend on tiles (<= half of physical).
_VMEM_BUDGET = min(_VMEM_PHYS // 2, 32 << 20)
_VMEM_LIMIT = _VMEM_BUDGET + (4 << 20)        # headroom for weights + scratch

_FUSED_MAX_SLAB = _VMEM_BUDGET // 5           # fused: in+out double-buffered ~ 4x slab
_REDUCE_BUF = _VMEM_BUDGET // 3               # pass 1: only input double-buffered
_APPLY_BUF = _VMEM_BUDGET // 5                # pass 2: in+out double-buffered


def _choose_chunk(C):
    """Inner-reduction chunk (lanes): ~64 KiB of f32 live, multiple of 128."""
    return max(128, ((64 * 1024) // (C * 4)) // 128 * 128)


def _pick_hw_tile(C, HW, itemsize, buf_bytes, align):
    """Largest HW tile (lanes) fitting buf_bytes, rounded down to `align`."""
    lanes = (buf_bytes // (C * itemsize)) // align * align
    lanes = max(align, lanes)
    return HW if HW <= lanes else lanes


# ---------------------------------------------------------------------------
# Shared in-kernel helpers.
# ---------------------------------------------------------------------------
def _mlp_gate(sum_col, max_col, w1_ref, w2_ref, HW):
    """Shared MLP on stacked (avg | max) columns, then sigmoid -> (C,1) f32."""
    avg = sum_col * (1.0 / HW)                              # (C, 1)
    pooled = jnp.concatenate([avg, max_col], axis=1)        # (C, 2)
    w1 = w1_ref[...].astype(jnp.float32)                    # (Cr, C)
    w2 = w2_ref[...].astype(jnp.float32)                    # (C, Cr)
    h = jnp.maximum(
        jnp.dot(w1, pooled, preferred_element_type=jnp.float32), 0.0)
    y = jnp.dot(w2, h, preferred_element_type=jnp.float32)  # (C, 2)
    return jax.nn.sigmoid(y[:, 0:1] + y[:, 1:2])            # (C, 1) f32


def _accumulate_tile(x_ref, sum_acc, max_acc, *, C, hw_tile, chunk, masked,
                     HW, tile_index):
    """Accumulate per-channel sum/max of x_ref (C, hw_tile) into VMEM scratch.

    Streams the tile in `chunk`-lane f32 chunks so no large f32 temporary is
    carried across loop iterations (bounded vreg pressure for large C).
    `masked` (static) guards lanes >= HW; only the last ragged tile pays it.
    """
    n_full = hw_tile // chunk
    rem = hw_tile - n_full * chunk

    if masked:
        # Hoist the (C, chunk) iota out of the loop (JAX does not CSE it);
        # per-chunk we only add a scalar offset.
        base = lax.broadcasted_iota(jnp.int32, (C, chunk), 1)
        tile_off = tile_index * hw_tile

    def add_chunk(start, width):
        xc = x_ref[:, pl.ds(start, width)].astype(jnp.float32)   # (C, width)
        if masked:
            lane = base[:, :width] + (tile_off + start)
            valid = lane < HW
            xs = jnp.where(valid, xc, 0.0)
            xm = jnp.where(valid, xc, -jnp.inf)
        else:
            xs = xc
            xm = xc
        sum_acc[...] = sum_acc[...] + jnp.sum(xs, axis=-1, keepdims=True)
        max_acc[...] = jnp.maximum(max_acc[...],
                                   jnp.max(xm, axis=-1, keepdims=True))

    if n_full == 1:
        add_chunk(0, chunk)
    elif n_full > 1:
        def body(i, carry):
            start = i * chunk
            if chunk % 128 == 0:
                start = pl.multiple_of(start, 128)
            add_chunk(start, chunk)
            return carry
        # Full unroll for short loops; partial unroll keeps vreg pressure low
        # while letting the LLO scheduler co-issue across iterations.
        lax.fori_loop(0, n_full, body, 0,
                      unroll=(True if n_full <= 8 else 4))
    if rem > 0:
        add_chunk(n_full * chunk, rem)


# ---------------------------------------------------------------------------
# Kernels.
# ---------------------------------------------------------------------------
def _make_fused_kernel(C, HW, chunk):
    def kernel(x_ref, w1_ref, w2_ref, o_ref, sum_acc, max_acc):
        # One whole (C, HW) slab per grid step (one batch element).
        sum_acc[...] = jnp.zeros(sum_acc.shape, sum_acc.dtype)
        max_acc[...] = jnp.full(max_acc.shape, -jnp.inf, max_acc.dtype)
        _accumulate_tile(x_ref, sum_acc, max_acc, C=C, hw_tile=HW, chunk=chunk,
                         masked=False, HW=HW, tile_index=0)
        gate = _mlp_gate(sum_acc[...], max_acc[...], w1_ref, w2_ref, HW)  # f32
        o_ref[...] = (x_ref[...].astype(jnp.float32) * gate).astype(o_ref.dtype)

    return kernel


def _make_reduce_kernel(C, HW, hw_tile, chunk, n_tiles, ragged):
    def kernel(x_ref, w1_ref, w2_ref, gate_ref, sum_acc, max_acc):
        t = pl.program_id(1)

        @pl.when(t == 0)
        def _init():
            sum_acc[...] = jnp.zeros(sum_acc.shape, sum_acc.dtype)
            max_acc[...] = jnp.full(max_acc.shape, -jnp.inf, max_acc.dtype)

        if ragged:
            # Unmasked hot path for all tiles except the last ragged one.
            @pl.when(t < n_tiles - 1)
            def _full_tiles():
                _accumulate_tile(x_ref, sum_acc, max_acc, C=C, hw_tile=hw_tile,
                                 chunk=chunk, masked=False, HW=HW, tile_index=t)

            @pl.when(t == n_tiles - 1)
            def _last_tile():
                _accumulate_tile(x_ref, sum_acc, max_acc, C=C, hw_tile=hw_tile,
                                 chunk=chunk, masked=True, HW=HW, tile_index=t)
        else:
            _accumulate_tile(x_ref, sum_acc, max_acc, C=C, hw_tile=hw_tile,
                             chunk=chunk, masked=False, HW=HW, tile_index=t)

        @pl.when(t == n_tiles - 1)
        def _finalize():
            gate = _mlp_gate(sum_acc[...], max_acc[...], w1_ref, w2_ref, HW)
            gate_ref[...] = gate.astype(gate_ref.dtype)

    return kernel


def _apply_kernel(x_ref, gate_ref, o_ref):
    # x_ref: (C, T); gate_ref: (C, 1) f32 -> lane-broadcast multiply in f32.
    o_ref[...] = (x_ref[...].astype(jnp.float32) * gate_ref[...]).astype(o_ref.dtype)


# ---------------------------------------------------------------------------
# Wrapper.
# ---------------------------------------------------------------------------
@functools.partial(jax.jit, static_argnames=("force_two_pass", "hw_tile_override"))
def channel_attention(x_nchw, w1, w2, *, force_two_pass=False,
                      hw_tile_override=None):
    """x_nchw: (B, C, H, W); w1: (C//r, C); w2: (C, C//r) — squeezed 1x1 weights."""
    B, C, H, W = x_nchw.shape
    Cr = w1.shape[0]
    HW = H * W
    itemsize = jnp.dtype(x_nchw.dtype).itemsize
    w_itemsize = jnp.dtype(w1.dtype).itemsize

    # Free reshape: collapses contiguous minor dims; no transpose.
    x = x_nchw.reshape(B, C, HW)

    chunk_base = _choose_chunk(C)
    slab_bytes = C * HW * itemsize

    # -------- Fused single-pass fast path: whole (C, HW) slab fits VMEM. ----
    if slab_bytes <= _FUSED_MAX_SLAB and not force_two_pass:
        chunk = min(chunk_base, HW)
        out = pl.pallas_call(
            _make_fused_kernel(C, HW, chunk),
            out_shape=jax.ShapeDtypeStruct((B, C, HW), x.dtype),
            grid_spec=pltpu.PrefetchScalarGridSpec(
                num_scalar_prefetch=0,
                grid=(B,),
                in_specs=[
                    pl.BlockSpec((None, C, HW), lambda b: (b, 0, 0)),
                    pl.BlockSpec((Cr, C), lambda b: (0, 0)),
                    pl.BlockSpec((C, Cr), lambda b: (0, 0)),
                ],
                out_specs=pl.BlockSpec((None, C, HW), lambda b: (b, 0, 0)),
                scratch_shapes=[pltpu.VMEM((C, 1), jnp.float32),   # running sum
                                pltpu.VMEM((C, 1), jnp.float32)],  # running max
            ),
            compiler_params=pltpu.CompilerParams(
                dimension_semantics=("parallel",),
                vmem_limit_bytes=_VMEM_LIMIT),
            cost_estimate=pl.CostEstimate(
                flops=3 * B * C * HW + 8 * B * C * Cr,
                transcendentals=B * C,
                bytes_accessed=2 * B * C * HW * itemsize
                + 2 * C * Cr * w_itemsize),
        )(x, w1, w2)
        return out.reshape(B, C, H, W)

    # -------- Two-pass path: streaming reduce -> gate -> apply. -------------
    # Pass 1 tile: only the input is double-buffered -> larger HW tile.
    if hw_tile_override is not None:
        r_tile = min(int(hw_tile_override), HW) if HW > int(hw_tile_override) else HW
        r_tile = int(hw_tile_override) if HW > int(hw_tile_override) else HW
    else:
        r_tile = _pick_hw_tile(C, HW, itemsize, _REDUCE_BUF, chunk_base)
    chunk = min(chunk_base, r_tile)
    if r_tile != HW and r_tile % chunk != 0:
        chunk = 128 if r_tile % 128 == 0 else r_tile
    r_tiles = pl.cdiv(HW, r_tile)
    ragged = (r_tiles * r_tile) != HW

    gate = pl.pallas_call(
        _make_reduce_kernel(C, HW, r_tile, chunk, r_tiles, ragged),
        out_shape=jax.ShapeDtypeStruct((B, C, 1), jnp.float32),
        grid_spec=pltpu.PrefetchScalarGridSpec(
            num_scalar_prefetch=0,
            grid=(B, r_tiles),
            in_specs=[
                pl.BlockSpec((None, C, r_tile), lambda b, t: (b, 0, t)),
                pl.BlockSpec((Cr, C), lambda b, t: (0, 0)),
                pl.BlockSpec((C, Cr), lambda b, t: (0, 0)),
            ],
            out_specs=pl.BlockSpec((None, C, 1), lambda b, t: (b, 0, 0)),
            scratch_shapes=[pltpu.VMEM((C, 1), jnp.float32),   # running sum
                            pltpu.VMEM((C, 1), jnp.float32)],  # running max
        ),
        compiler_params=pltpu.CompilerParams(
            dimension_semantics=("parallel", "arbitrary"),
            vmem_limit_bytes=_VMEM_LIMIT),
        cost_estimate=pl.CostEstimate(
            flops=2 * B * C * HW + 8 * B * C * Cr,
            transcendentals=B * C,
            bytes_accessed=B * C * HW * itemsize + B * C * 4
            + 2 * C * Cr * w_itemsize),
    )(x, w1, w2)

    # Pass 2 tile: in + out double-buffered -> smaller HW tile.
    if hw_tile_override is not None:
        a_tile = int(hw_tile_override) if HW > int(hw_tile_override) else HW
    else:
        a_tile = _pick_hw_tile(C, HW, itemsize, _APPLY_BUF, 128)
    a_tiles = pl.cdiv(HW, a_tile)

    out = pl.pallas_call(
        _apply_kernel,
        out_shape=jax.ShapeDtypeStruct((B, C, HW), x.dtype),
        grid_spec=pltpu.PrefetchScalarGridSpec(
            num_scalar_prefetch=0,
            grid=(B, a_tiles),
            in_specs=[
                pl.BlockSpec((None, C, a_tile), lambda b, t: (b, 0, t)),
                pl.BlockSpec((None, C, 1), lambda b, t: (b, 0, 0)),
            ],
            out_specs=pl.BlockSpec((None, C, a_tile), lambda b, t: (b, 0, t)),
        ),
        compiler_params=pltpu.CompilerParams(
            dimension_semantics=("parallel", "parallel"),
            vmem_limit_bytes=_VMEM_LIMIT),
        cost_estimate=pl.CostEstimate(
            flops=B * C * HW,
            transcendentals=0,
            bytes_accessed=2 * B * C * HW * itemsize + B * C * 4),
    )(x, gate)

    return out.reshape(B, C, H, W)


def channel_attention_ref(x, w1, w2):
    """Pure-JAX reference mirroring the PyTorch forward."""
    avg = x.mean(axis=(2, 3))                      # (B, C)
    mx = x.max(axis=(2, 3))                        # (B, C)

    def mlp(v):
        h = jnp.maximum(v @ w1.T, 0.0)
        return h @ w2.T

    gate = jax.nn.sigmoid(mlp(avg) + mlp(mx))      # (B, C)
    return x * gate[:, :, None, None]


if __name__ == "__main__":
    B, C, H, W = 2, 32, 16, 16
    ratio = 16
    Cr = C // ratio

    key = jax.random.PRNGKey(0)
    kx, k1, k2, kx2 = jax.random.split(key, 4)

    x = jax.random.normal(kx, (B, C, H, W), dtype=jnp.float32)
    # Conv2d(C, C//ratio, 1, bias=False).weight -> (Cr, C, 1, 1); stored as (Cr, C)
    w1 = jax.random.normal(k1, (Cr, C), dtype=jnp.float32) * 0.1
    # Conv2d(C//ratio, C, 1, bias=False).weight -> (C, Cr, 1, 1); stored as (C, Cr)
    w2 = jax.random.normal(k2, (C, Cr), dtype=jnp.float32) * 0.1

    # 1) Fused single-pass path (slab fits VMEM), f32.
    out = jax.block_until_ready(channel_attention(x, w1, w2))
    ref = channel_attention_ref(x, w1, w2)
    assert out.shape == (B, C, H, W)
    assert jnp.allclose(out, ref, atol=1e-5, rtol=1e-5), "fused f32 mismatch"

    # 2) Two-pass path with a ragged last HW tile (HW=144, tile=128, n_tiles=2).
    H2 = W2 = 12
    x2 = jax.random.normal(kx2, (B, C, H2, W2), dtype=jnp.float32)
    out2 = jax.block_until_ready(
        channel_attention(x2, w1, w2, force_two_pass=True, hw_tile_override=128))
    ref2 = channel_attention_ref(x2, w1, w2)
    assert jnp.allclose(out2, ref2, atol=1e-5, rtol=1e-5), "two-pass ragged mismatch"

    # 3) bf16 input through the fused path (f32 accumulation + f32 gate inside).
    xb = x.astype(jnp.bfloat16)
    outb = jax.block_until_ready(channel_attention(xb, w1, w2))
    refb = channel_attention_ref(xb.astype(jnp.float32), w1, w2)
    assert outb.dtype == jnp.bfloat16
    assert jnp.allclose(outb.astype(jnp.float32), refb, atol=5e-2, rtol=5e-2), \
        "fused bf16 mismatch"

    print("KERNEL_OK")
</pallas_src>

<mosaic_0001>
module attributes {stable_mosaic.version = 11 : i64} {
  func.func @kernel(%arg0: i32, %arg1: memref<1x32x256xf32, #tpu.memory_space<vmem>>, %arg2: memref<2x32xf32, #tpu.memory_space<vmem>>, %arg3: memref<32x2xf32, #tpu.memory_space<vmem>>, %arg4: memref<1x32x256xf32, #tpu.memory_space<vmem>>, %arg5: memref<32x1xf32, #tpu.memory_space<vmem>>, %arg6: memref<32x1xf32, #tpu.memory_space<vmem>>) attributes {dimension_semantics = [#tpu.dimension_semantics<parallel>], iteration_bounds = array<i64: 2>, scalar_prefetch = 0 : i64, scratch_operands = 2 : i64, tpu.core_type = #tpu.core_type<tc>, window_params = [{transform_indices = @transform_0, window_bounds = array<i64: 1, 32, 256>}, {pipeline_mode = #tpu.pipeline_mode<synchronous>, transform_indices = @transform_1, window_bounds = array<i64: 2, 32>}, {pipeline_mode = #tpu.pipeline_mode<synchronous>, transform_indices = @transform_2, window_bounds = array<i64: 32, 2>}, {transform_indices = @transform_3, window_bounds = array<i64: 1, 32, 256>}]} {
    %cst = arith.constant 0.000000e+00 : f32
    %0 = vector.broadcast %cst : f32 to vector<32x1xf32>
    %c0 = arith.constant 0 : index
    %c0_0 = arith.constant 0 : index
    %1 = vector.load %arg5[%c0, %c0_0] : memref<32x1xf32, #tpu.memory_space<vmem>>, vector<32x1xf32>
    tpu.vector_store %arg5[%c0, %c0_0], %0 {strides = array<i32>} : memref<32x1xf32, #tpu.memory_space<vmem>>, vector<32x1xf32>,
    %cst_1 = arith.constant 0xFF800000 : f32
    %2 = vector.broadcast %cst_1 : f32 to vector<32x1xf32>
    %c0_2 = arith.constant 0 : index
    %c0_3 = arith.constant 0 : index
    %3 = vector.load %arg6[%c0_2, %c0_3] : memref<32x1xf32, #tpu.memory_space<vmem>>, vector<32x1xf32>
    tpu.vector_store %arg6[%c0_2, %c0_3], %2 {strides = array<i32>} : memref<32x1xf32, #tpu.memory_space<vmem>>, vector<32x1xf32>,
    %c0_4 = arith.constant 0 : index
    %c0_5 = arith.constant 0 : index
    %c0_6 = arith.constant 0 : index
    %4 = vector.load %arg1[%c0_4, %c0_5, %c0_6] : memref<1x32x256xf32, #tpu.memory_space<vmem>>, vector<1x32x256xf32>
    %5 = vector.shape_cast %4 : vector<1x32x256xf32> to vector<32x256xf32>
    %c0_7 = arith.constant 0 : index
    %c0_8 = arith.constant 0 : index
    %6 = vector.load %arg5[%c0_7, %c0_8] : memref<32x1xf32, #tpu.memory_space<vmem>>, vector<32x1xf32>
    %cst_9 = arith.constant dense<0.000000e+00> : vector<32xf32>
    %7 = vector.multi_reduction <add>, %5, %cst_9 [1] : vector<32x256xf32> to vector<32xf32>
    %8 = vector.shape_cast %7 : vector<32xf32> to vector<32x1xf32>
    %9 = arith.addf %6, %8 : vector<32x1xf32>
    %c0_10 = arith.constant 0 : index
    %c0_11 = arith.constant 0 : index
    %10 = vector.load %arg5[%c0_10, %c0_11] : memref<32x1xf32, #tpu.memory_space<vmem>>, vector<32x1xf32>
    tpu.vector_store %arg5[%c0_10, %c0_11], %9 {strides = array<i32>} : memref<32x1xf32, #tpu.memory_space<vmem>>, vector<32x1xf32>,
    %c0_12 = arith.constant 0 : index
    %c0_13 = arith.constant 0 : index
    %11 = vector.load %arg6[%c0_12, %c0_13] : memref<32x1xf32, #tpu.memory_space<vmem>>, vector<32x1xf32>
    %cst_14 = arith.constant dense<0xFF800000> : vector<32xf32>
    %12 = vector.multi_reduction <maximumf>, %5, %cst_14 [1] : vector<32x256xf32> to vector<32xf32>
    %13 = vector.shape_cast %12 : vector<32xf32> to vector<32x1xf32>
    %14 = arith.maximumf %11, %13 : vector<32x1xf32>
    %c0_15 = arith.constant 0 : index
    %c0_16 = arith.constant 0 : index
    %15 = vector.load %arg6[%c0_15, %c0_16] : memref<32x1xf32, #tpu.memory_space<vmem>>, vector<32x1xf32>
    tpu.vector_store %arg6[%c0_15, %c0_16], %14 {strides = array<i32>} : memref<32x1xf32, #tpu.memory_space<vmem>>, vector<32x1xf32>,
    %c0_17 = arith.constant 0 : index
    %c0_18 = arith.constant 0 : index
    %16 = vector.load %arg5[%c0_17, %c0_18] : memref<32x1xf32, #tpu.memory_space<vmem>>, vector<32x1xf32>
    %c0_19 = arith.constant 0 : index
    %c0_20 = arith.constant 0 : index
    %17 = vector.load %arg6[%c0_19, %c0_20] : memref<32x1xf32, #tpu.memory_space<vmem>>, vector<32x1xf32>
    %cst_21 = arith.constant 3.906250e-03 : f32
    %18 = vector.broadcast %cst_21 : f32 to vector<32x1xf32>
    %19 = arith.mulf %16, %18 : vector<32x1xf32>
    %20 = tpu.concatenate %19, %17 in 1 : vector<32x1xf32>, vector<32x1xf32> -> vector<32x2xf32>
    %c0_22 = arith.constant 0 : index
    %c0_23 = arith.constant 0 : index
    %21 = vector.load %arg2[%c0_22, %c0_23] : memref<2x32xf32, #tpu.memory_space<vmem>>, vector<2x32xf32>
    %c0_24 = arith.constant 0 : index
    %c0_25 = arith.constant 0 : index
    %22 = vector.load %arg3[%c0_24, %c0_25] : memref<32x2xf32, #tpu.memory_space<vmem>>, vector<32x2xf32>
    %cst_26 = arith.constant dense<0.000000e+00> : vector<2x2xf32>
    %23 = tpu.matmul %21, %20, %cst_26 {dimension_numbers = #tpu.dot_dimension_numbers<[1], [0], [0], [1], [0, 0, 1, 1], [], []>} : vector<2x32xf32>, vector<32x2xf32>, vector<2x2xf32> -> vector<2x2xf32>
    %cst_27 = arith.constant 0.000000e+00 : f32
    %24 = vector.broadcast %cst_27 : f32 to vector<2x2xf32>
    %25 = arith.maximumf %23, %24 : vector<2x2xf32>
    %cst_28 = arith.constant dense<0.000000e+00> : vector<32x2xf32>
    %26 = tpu.matmul %22, %25, %cst_28 {dimension_numbers = #tpu.dot_dimension_numbers<[1], [0], [0], [1], [0, 0, 1, 1], [], []>} : vector<32x2xf32>, vector<2x2xf32>, vector<32x2xf32> -> vector<32x2xf32>
    %27 = vector.extract_strided_slice %26 {offsets = [0, 0], sizes = [32, 1], strides = [1, 1]} : vector<32x2xf32> to vector<32x1xf32>
    %28 = vector.extract_strided_slice %26 {offsets = [0, 1], sizes = [32, 1], strides = [1, 1]} : vector<32x2xf32> to vector<32x1xf32>
    %29 = arith.addf %27, %28 : vector<32x1xf32>
    %30 = arith.negf %29 : vector<32x1xf32>
    %31 = math.exp %30 : vector<32x1xf32>
    %cst_29 = arith.constant 1.000000e+00 : f32
    %32 = vector.broadcast %cst_29 : f32 to vector<32x1xf32>
    %33 = arith.addf %32, %31 : vector<32x1xf32>
    %34 = arith.divf %32, %33 : vector<32x1xf32>
    %c0_30 = arith.constant 0 : index
    %c0_31 = arith.constant 0 : index
    %c0_32 = arith.constant 0 : index
    %35 = vector.load %arg1[%c0_30, %c0_31, %c0_32] : memref<1x32x256xf32, #tpu.memory_space<vmem>>, vector<1x32x256xf32>
    %36 = vector.shape_cast %35 : vector<1x32x256xf32> to vector<32x256xf32>
    %37 = vector.broadcast %34 : vector<32x1xf32> to vector<32x256xf32>
    %38 = arith.mulf %36, %37 : vector<32x256xf32>
    %c0_33 = arith.constant 0 : index
    %c0_34 = arith.constant 0 : index
    %c0_35 = arith.constant 0 : index
    %39 = vector.load %arg4[%c0_33, %c0_34, %c0_35] : memref<1x32x256xf32, #tpu.memory_space<vmem>>, vector<1x32x256xf32>
    %40 = vector.shape_cast %39 : vector<1x32x256xf32> to vector<32x256xf32>
    %41 = vector.shape_cast %38 : vector<32x256xf32> to vector<1x32x256xf32>
    tpu.vector_store %arg4[%c0_33, %c0_34, %c0_35], %41 {strides = array<i32>} : memref<1x32x256xf32, #tpu.memory_space<vmem>>, vector<1x32x256xf32>,
    return
  }
  func.func @transform_0(%arg0: i32) -> (i32, i32, i32) {
    %c0_i32 = arith.constant 0 : i32
    %c0_i32_0 = arith.constant 0 : i32
    %c0_i32_1 = arith.constant 0 : i32
    return %arg0, %c0_i32, %c0_i32_0 : i32, i32, i32
  }
  func.func @transform_1(%arg0: i32) -> (i32, i32) {
    %c0_i32 = arith.constant 0 : i32
    %c0_i32_0 = arith.constant 0 : i32
    %c0_i32_1 = arith.constant 0 : i32
    return %c0_i32, %c0_i32_0 : i32, i32
  }
  func.func @transform_2(%arg0: i32) -> (i32, i32) {
    %c0_i32 = arith.constant 0 : i32
    %c0_i32_0 = arith.constant 0 : i32
    %c0_i32_1 = arith.constant 0 : i32
    return %c0_i32, %c0_i32_0 : i32, i32
  }
  func.func @transform_3(%arg0: i32) -> (i32, i32, i32) {
    %c0_i32 = arith.constant 0 : i32
    %c0_i32_0 = arith.constant 0 : i32
    %c0_i32_1 = arith.constant 0 : i32
    return %arg0, %c0_i32, %c0_i32_0 : i32, i32, i32
  }
}

</mosaic_0001>

<bundles_post_ra>
// kernel: channel_attention.1
= control target key start
LH: loop header
LB: loop body
LE: loop exit
PB: predicated region body
PF: predicated region fallthrough
CT: control target
= control target key end

     0   :  { %s639_s12 = smov 0   ;;  %s738_s0 = inlined_call_operand.vmem [shape: f32[2,32,256], index: 0, kind: input, shape index: {}]   ;;  %s739_s1 = inlined_call_operand.vmem [shape: f32[2,32], index: 1, kind: input, shape index: {}]   ;;  %s740_s2 = inlined_call_operand.vmem [shape: f32[32,2], index: 2, kind: input, shape index: {}]   ;;  %s741_s3 = inlined_call_operand.vmem [shape: f32[2,32,256], index: 3, kind: output, shape index: {}]  }
   0x1 LB: > { %s539_s13 = sadd.s32 4294967295, %s612_s12   ;;  %p543_p0 = scmp.ge.s32.totalorder %s612_s12, 1  ;;  %s612_s12 = sphi %s639_s12, %s13_s12  }
   0x2   : > { %p137_p1 = scmp.lt.s32.totalorder %s612_s12, 3 }
   0x4   : > { %p138_p2 = pnand %p543_p0, %p137_p1 }
   0x5   : > { %p161_p3 = scmp.lt.s32.totalorder (!%p138_p2), %s539_s13, 1  ;;  %s616_s18 = smov (!%p138_p2), 1  }
   0x6   : > { %141 = sbr.rel (%p138_p2) target bundleno = 801 (0x321), region = 32  ;;  %s617_s29 = smov (!%p138_p2), 127  }
   0xb   : > { %vm171_vm0 = vcmask 7168   ;;  %v614_v0 = vmov -inf   ;;  %s743_s13 = smov (!%p161_p3, %s539_s13), 1  ;;  %v615_v17 = vmov 0.0   ;;  %vm273_vm1 = vcmask 261120  }
   0xc   : > { %177 = vst.msk [vmem:[#allocation3 + $0x8] sm:$0xff] %vm171_vm0, %v614_v0  ;;  %s560_s14 = sshll.u32 %s743_s13, 6  ;;  %vm311_vm2 = vcmask 1041408   ;;  %vm298_vm3 = vcmask 15360  }
   0xd   : > { %176 = vst.msk [vmem:[#allocation3] sm:$0xff] %vm171_vm0, %v614_v0  ;;  %s165_s17 = scalar_lea.vmem %s738_s0, %s560_s14  ;;  %s170_s5 = scalar_lea.vmem %s741_s3, %s560_s14 }
   0xe   : > { %178 = vst.msk [vmem:[#allocation3 + $0x10] sm:$0xff] %vm171_vm0, %v614_v0  ;;  %v659_v1 = vld [vmem:[%s165_s17 + $0x10] sm:$0xff]  ;;  %v661_v2 = vld [vmem:[%s165_s17 + $0x18] sm:$0xff]  ;;  %v673_v8 = vld [vmem:[%s165_s17] sm:$0xff] }
   0xf   : > { %179 = vst.msk [vmem:[#allocation3 + $0x18] sm:$0xff] %vm171_vm0, %v614_v0  ;;  %v219_v3 = vmax.f32 %v659_v1, %v661_v2  ;;  %v665_v4 = vld [vmem:[%s165_s17 + $0x30] sm:$0xff]  ;;  %v667_v5 = vld [vmem:[%s165_s17 + $0x38] sm:$0xff]  ;;  %v675_v9 = vld [vmem:[%s165_s17 + $0x8] sm:$0xff]  ;;  %v195_v15 = vadd.f32 %v661_v2, %v659_v1 }
  0x10   : > { %v225_v6 = vmax.f32 %v665_v4, %v667_v5  ;;  %v201_v7 = vadd.f32 %v667_v5, %v665_v4  ;;  %v677_v10 = vld [vmem:[%s165_s17 + $0x20] sm:$0xff]  ;;  %v679_v11 = vld [vmem:[%s165_s17 + $0x28] sm:$0xff]  ;;  %v216_v12 = vmax.f32 %v673_v8, %v675_v9  ;;  %v192_v16 = vadd.f32 %v675_v9, %v673_v8  ;;  %175 = vst.msk [vmem:[#allocation2 + $0x18] sm:$0xff] %vm171_vm0, %v615_v17 }
  0x11   : > { %220 = vmax.xlane.f32.xlu1 %v219_v3  ;;  %v222_v13 = vmax.f32 %v677_v10, %v679_v11  ;;  %v198_v14 = vadd.f32 %v679_v11, %v677_v10  ;;  %172 = vst.msk [vmem:[#allocation2] sm:$0xff] %vm171_vm0, %v615_v17  ;;  %v268_v3 = vld [vmem:[%s739_s1] sm:$0x3] }
  0x12   : > { %226 = vmax.xlane.f32.xlu0 %v225_v6  ;;  %202 = vadd.xlane.f32.xlu2 %v201_v7  ;;  %173 = vst.msk [vmem:[#allocation2 + $0x8] sm:$0xff] %vm171_vm0, %v615_v17 }
  0x13   : > { %174 = vst.msk [vmem:[#allocation2 + $0x10] sm:$0xff] %vm171_vm0, %v615_v17  ;;  %v213_v18 = vld [vmem:[#allocation3 + $0x8] sm:$0xff] }
  0x14   : > { %v212_v27 = vld [vmem:[#allocation3] sm:$0xff] }
  0x15   : > { %v214_v28 = vld [vmem:[#allocation3 + $0x10] sm:$0xff] }
  0x16   : > { %v215_v19 = vld [vmem:[#allocation3 + $0x18] sm:$0xff] }
  0x17   : > { %v191_v20 = vld [vmem:[#allocation2 + $0x18] sm:$0xff] }
  0x18   : > { %v188_v45 = vld [vmem:[#allocation2] sm:$0xff] }
  0x19   : > { %217 = vmax.xlane.f32.xlu1 %v216_v12  ;;  %v189_v42 = vld [vmem:[#allocation2 + $0x8] sm:$0xff] }
  0x1a   : > { %223 = vmax.xlane.f32.xlu0 %v222_v13  ;;  %199 = vadd.xlane.f32.xlu2 %v198_v14  ;;  %v190_v29 = vld [vmem:[#allocation2 + $0x10] sm:$0xff]  ;;  %v269_v13 = vld [vmem:[%s740_s2] sm:$0xff]  ;;  %v270_v14 = vld [vmem:[%s740_s2 + $0x8] sm:$0xff] }
  0x21   : > { %193 = vadd.xlane.f32.xlu1 %v192_v16  ;;  %v271_v16 = vld [vmem:[%s740_s2 + $0x10] sm:$0xff] }
  0x22   : > { %196 = vadd.xlane.f32.xlu0 %v195_v15  ;;  %v272_v15 = vld [vmem:[%s740_s2 + $0x18] sm:$0xff] }
  0x84   : > { %v221_v21 = vpop.xlane.xlu1 %220 }
  0x85   : > { %v229_v22 = vmax.f32 %v213_v18, %v221_v21  ;;  %v227_v23 = vpop.xlane.xlu0 %226  ;;  %v203_v24 = vpop.xlane.xlu2 %202  ;;  %v618_v21 = vmov 0  }
  0x86   : > { %v231_v25 = vmax.f32 %v215_v19, %v227_v23  ;;  %v207_v26 = vadd.f32 %v203_v24, %v191_v20  ;;  %588 = vset.pattern.permute.xlu0 %v618_v21  ;;  %587 = vset.pattern.permute.xlu1 %v618_v21 }
  0x87   : > { %233 = vst.msk [vmem:[#allocation3 + $0x8] sm:$0xff] %vm171_vm0, %v229_v22  ;;  %589 = vset.pattern.permute.xlu2 %v618_v21 }
  0x88   : > { %235 = vst.msk [vmem:[#allocation3 + $0x18] sm:$0xff] %vm171_vm0, %v231_v25 }
  0x89   : > { %211 = vst.msk [vmem:[#allocation2 + $0x18] sm:$0xff] %vm171_vm0, %v207_v26 }
  0x8c   : > { %v218_v30 = vpop.xlane.xlu1 %217 }
  0x8d   : > { %v228_v31 = vmax.f32 %v212_v27, %v218_v30  ;;  %v224_v32 = vpop.xlane.xlu0 %223  ;;  %v200_v33 = vpop.xlane.xlu2 %199 }
  0x8e   : > { %v230_v34 = vmax.f32 %v214_v28, %v224_v32  ;;  %v206_v35 = vadd.f32 %v200_v33, %v190_v29  ;;  %v241_v38 = vld [vmem:[#allocation3 + $0x8] sm:$0xff] }
  0x8f   : > { %232 = vst.msk [vmem:[#allocation3] sm:$0xff] %vm171_vm0, %v228_v31  ;;  %v243_v36 = vld [vmem:[#allocation3 + $0x18] sm:$0xff] }
  0x90   : > { %234 = vst.msk [vmem:[#allocation3 + $0x10] sm:$0xff] %vm171_vm0, %v230_v34  ;;  %v239_v48 = vld [vmem:[#allocation2 + $0x18] sm:$0xff] }
  0x91   : > { %210 = vst.msk [vmem:[#allocation2 + $0x10] sm:$0xff] %vm171_vm0, %v206_v35  ;;  %v247_v50 = vmul.f32 0.00390625, %v239_v48 }
  0x94   : > { %v194_v46 = vpop.xlane.xlu1 %193 }
  0x95   : > { %v197_v43 = vpop.xlane.xlu0 %196  ;;  %v204_v47 = vadd.f32 %v194_v46, %v188_v45 }
  0x96   : > { %v240_v37 = vld [vmem:[#allocation3] sm:$0xff]  ;;  %v205_v44 = vadd.f32 %v197_v43, %v189_v42 }
  0x97   : > { %v582_v39 = vpack.i.bf16 %v240_v37, %v241_v38  ;;  %v242_v40 = vld [vmem:[#allocation3 + $0x10] sm:$0xff]  ;;  %208 = vst.msk [vmem:[#allocation2] sm:$0xff] %vm171_vm0, %v204_v47 }
  0x98   : > { %v577_v41 = vpack.i.bf16 %v242_v40, %v243_v36  ;;  %209 = vst.msk [vmem:[#allocation2 + $0x8] sm:$0xff] %vm171_vm0, %v205_v44  ;;  %v238_v49 = vld [vmem:[#allocation2 + $0x10] sm:$0xff] }
  0x99   : > { %583 = vrot.lane.b32.xlu0 %v582_v39, %s616_s18  ;;  %v246_v51 = vmul.f32 0.00390625, %v238_v49 }
  0x9a   : > { %578 = vrot.lane.b32.xlu2 %v577_v41, %s616_s18 }
  0x9e   : > { %v236_v58 = vld [vmem:[#allocation2] sm:$0xff] }
  0x9f   : > { %v237_v57 = vld [vmem:[#allocation2 + $0x8] sm:$0xff]  ;;  %v244_v63 = vmul.f32 0.00390625, %v236_v58 }
  0xa0   : > { %v245_v62 = vmul.f32 0.00390625, %v237_v57 }
  0xf4   : > { %v579_v52 = vpop.permute.xlu2 %578 }
  0xf5   : > { %v581_v53 = vunpack.i.h.bf16 %v579_v52  ;;  %v580_v54 = vunpack.i.l.bf16 %v579_v52 }
  0xf7   : > { %v267_v55 = vsel %vm171_vm0, %v247_v50, %v580_v54  ;;  %v266_v56 = vsel %vm171_vm0, %v246_v51, %v581_v53 }
  0xf8   : > { %289 = vmatpush.msra.mxu0 %v267_v55 }
  0xfa   : > { %290 = vmatpush.msra.mxu0 %v266_v56 }
 0x10b   : > { %v584_v59 = vpop.permute.xlu0 %583 }
 0x10c   : > { %v586_v60 = vunpack.i.h.bf16 %v584_v59  ;;  %v585_v61 = vunpack.i.l.bf16 %v584_v59 }
 0x10e   : > { %v265_v0 = vsel %vm171_vm0, %v245_v62, %v585_v61  ;;  %v264_v6 = vsel %vm171_vm0, %v244_v63, %v586_v60 }
 0x10f   : > { %291 = vmatpush.msra.mxu0 %v265_v0 }
 0x111   : > { %292 = vmatpush.msra.mxu0 %v264_v6 }
 0x112   : > { %548 = vmatmul.msk.f32.vlgmr.msra.gmra.mxu0 %vm273_vm1, %v268_v3 }
 0x18f   : > { %v294_v7 = vpop.f32.mrf.mxu0 }
 0x190   : > { %v297_v12 = vmax.f32 %v294_v7, 0.0 }
 0x192   : > { %549 = vmatpush.msk.msra.mxu1 %vm311_vm2, %v297_v12  ;;  %562 = vmatpush.msk.msra.mxu2 %vm311_vm2, %v297_v12 }
 0x193   : > { %563 = vmatpush.msk.msra.mxu3 %vm311_vm2, %v297_v12  ;;  %550 = vmatmul.msk.f32.vlgmr.msra.gmra.mxu1 %vm298_vm3, %v269_v13 }
 0x194   : > { %551 = vmatmul.msk.f32.vlgmr.msra.gmra.mxu2 %vm298_vm3, %v270_v14  ;;  %553 = vmatmul.msk.f32.vlgmr.msra.gmra.mxu3 %vm298_vm3, %v272_v15 }
 0x19c   : > { %552 = vmatmul.msk.f32.gmra.mxu2 %vm298_vm3, %v271_v16 }
 0x210   : > { %v332_v17 = vpop.f32.mrf.mxu1 }
 0x211   : > { %348 = vrot.lane.b32.xlu1 %v332_v17, %s617_s29 }
 0x217   : > { %v335_v18 = vpop.f32.mrf.mxu2  ;;  %v341_v19 = vpop.f32.mrf.mxu3 }
 0x218   : > { %350 = vrot.lane.b32.xlu2 %v335_v18, %s617_s29 }
 0x21f   : > { %v338_v20 = vpop.f32.mrf.mxu2 }
 0x220   : > { %354 = vrot.lane.b32.xlu2 %v341_v19, %s617_s29  ;;  %352 = vrot.lane.b32.xlu0 %v338_v20, %s617_s29 }
 0x272   : > { %v351_v22 = vpop.permute.xlu2 %350 }
 0x273   : > { %v361_v23 = vadd.f32 %v351_v22, %v335_v18 }
 0x275   : > { %v555_v24 = vmul.f32 -1.442695, %v361_v23 }
 0x277   : > { %590 = vpow2.f32 %v555_v24 }
 0x27a   : > { %v355_v25 = vpop.permute.xlu2 %354 }
 0x27b   : > { %v363_v26 = vadd.f32 %v355_v25, %v341_v19 }
 0x27d   : > { %v591_v27 = vpop.eup %590  ;;  %v557_v28 = vmul.f32 -1.442695, %v363_v26 }
 0x27e   : > { %v377_v29 = vadd.f32 1.0, %v591_v27 }
 0x280   : > { %592 = vrcp.f32 %v377_v29  ;;  %v406_v38 = vand.u32 2147483648, %v377_v29  ;;  %v404_v40 = vand.u32 2147483647, %v377_v29  ;;  %vm400_vm5 = vweird.f32 %v377_v29 }
 0x281   : > { %594 = vpow2.f32 %v557_v28 }
 0x282   : > { %v407_v42 = vor.u32 1.1754944e-38, %v406_v38  ;;  %vm405_vm7 = vcmp.eq.f32.partialorder %v404_v40, 8.507059e+37 }
 0x283   : > { %v349_v30 = vpop.permute.xlu1 %348 }
 0x284   : > { %v360_v31 = vadd.f32 %v349_v30, %v332_v17 }
 0x286   : > { %v593_v32 = vpop.eup %592  ;;  %v554_v33 = vmul.f32 -1.442695, %v360_v31 }
 0x287   : > { %v595_v34 = vpop.eup %594  ;;  %v396_v35 = vmul.f32 %v593_v32, %v377_v29  ;;  %vm401_vm4 = vweird.f32 %v593_v32 }
 0x288   : > { %596 = vpow2.f32 %v554_v33  ;;  %v379_v37 = vadd.f32 1.0, %v595_v34  ;;  %vm402_vm6 = vmor %vm400_vm5, %vm401_vm4 }
 0x289   : > { %v397_v36 = vsub.f32 1.0, %v396_v35 }
 0x28a   : > { %598 = vrcp.f32 %v379_v37  ;;  %v436_v7 = vand.u32 2147483648, %v379_v37  ;;  %vm430_vm13 = vweird.f32 %v379_v37  ;;  %v434_v12 = vand.u32 2147483647, %v379_v37 }
 0x28b   : > { %v398_v39 = vmul.f32 %v593_v32, %v397_v36 }
 0x28c   : > { %v437_v16 = vor.u32 1.1754944e-38, %v436_v7  ;;  %vm435_vm15 = vcmp.eq.f32.partialorder %v434_v12, 8.507059e+37 }
 0x28d   : > { %v399_v41 = vadd.f32 %v593_v32, %v398_v39 }
 0x28e   : > { %v597_v43 = vpop.eup %596 }
 0x28f   : > { %v403_v44 = vsel %vm402_vm6, %v593_v32, %v399_v41  ;;  %v376_v45 = vadd.f32 1.0, %v597_v43 }
 0x290   : > { %v408_v46 = vsel %vm405_vm7, %v407_v42, %v403_v44  ;;  %v599_v49 = vpop.eup %598 }
 0x291   : > { %455 = vperm.xlu0 %588, %v408_v46   ;;  %600 = vrcp.f32 %v376_v45  ;;  %v426_v51 = vmul.f32 %v599_v49, %v379_v37  ;;  %v391_v56 = vand.u32 2147483648, %v376_v45  ;;  %v389_v59 = vand.u32 2147483647, %v376_v45 }
 0x292   : > { %v353_v47 = vpop.permute.xlu0 %352  ;;  %vm385_vm9 = vweird.f32 %v376_v45  ;;  %vm431_vm12 = vweird.f32 %v599_v49 }
 0x293   : > { %v362_v48 = vadd.f32 %v353_v47, %v338_v20  ;;  %v427_v55 = vsub.f32 1.0, %v426_v51  ;;  %v392_v63 = vor.u32 1.1754944e-38, %v391_v56  ;;  %vm390_vm11 = vcmp.eq.f32.partialorder %v389_v59, 8.507059e+37  ;;  %vm432_vm14 = vmor %vm430_vm13, %vm431_vm12 }
 0x295   : > { %v556_v50 = vmul.f32 -1.442695, %v362_v48  ;;  %v428_v62 = vmul.f32 %v599_v49, %v427_v55 }
 0x297   : > { %602 = vpow2.f32 %v556_v50  ;;  %v601_v52 = vpop.eup %600  ;;  %v429_v6 = vadd.f32 %v599_v49, %v428_v62 }
 0x298   : > { %v381_v53 = vmul.f32 %v601_v52, %v376_v45  ;;  %vm386_vm8 = vweird.f32 %v601_v52 }
 0x299   : > { %vm387_vm10 = vmor %vm385_vm9, %vm386_vm8  ;;  %v433_v14 = vsel %vm432_vm14, %v599_v49, %v429_v6 }
 0x29a   : > { %v382_v54 = vsub.f32 1.0, %v381_v53  ;;  %v438_v18 = vsel %vm435_vm15, %v437_v16, %v433_v14 }
 0x29c   : > { %v383_v58 = vmul.f32 %v601_v52, %v382_v54 }
 0x29d   : > { %v603_v57 = vpop.eup %602 }
 0x29e   : > { %v378_v60 = vadd.f32 1.0, %v603_v57  ;;  %v384_v61 = vadd.f32 %v601_v52, %v383_v58 }
 0x2a0   : > { %604 = vrcp.f32 %v378_v60  ;;  %v388_v0 = vsel %vm387_vm10, %v601_v52, %v384_v61  ;;  %v421_v19 = vand.u32 2147483648, %v378_v60  ;;  %v419_v21 = vand.u32 2147483647, %v378_v60 }
 0x2a1   : > { %v393_v3 = vsel %vm390_vm11, %v392_v63, %v388_v0  ;;  %vm415_vm1 = vweird.f32 %v378_v60 }
 0x2a2   : > { %450 = vperm.xlu1 %587, %v393_v3   ;;  %v422_v23 = vor.u32 1.1754944e-38, %v421_v19  ;;  %vm420_vm3 = vcmp.eq.f32.partialorder %v419_v21, 8.507059e+37 }
 0x2a6   : > { %v605_v13 = vpop.eup %604 }
 0x2a7   : > { %v411_v15 = vmul.f32 %v605_v13, %v378_v60  ;;  %vm416_vm0 = vweird.f32 %v605_v13 }
 0x2a8   : > { %vm417_vm2 = vmor %vm415_vm1, %vm416_vm0 }
 0x2a9   : > { %v412_v17 = vsub.f32 1.0, %v411_v15 }
 0x2aa   : > { %465 = vperm.xlu1 %587, %v438_v18  }
 0x2ab   : > { %v413_v20 = vmul.f32 %v605_v13, %v412_v17 }
 0x2ad   : > { %v414_v22 = vadd.f32 %v605_v13, %v413_v20 }
 0x2af   : > { %v418_v24 = vsel %vm417_vm2, %v605_v13, %v414_v22 }
 0x2b0   : > { %v423_v25 = vsel %vm420_vm3, %v422_v23, %v418_v24 }
 0x2b1   : > { %460 = vperm.xlu2 %589, %v423_v25  }
 0x303   : > { %v456_v26 = vpop.permute.xlu0 %455 }
 0x304   : > { %v470_v27 = vmul.f32 %v456_v26, %v659_v1  ;;  %v471_v28 = vmul.f32 %v456_v26, %v661_v2 }
 0x306   : > { %478 = vst [vmem:[%s170_s5 + $0x10] sm:$0xff] %v470_v27 }
 0x307   : > { %479 = vst [vmem:[%s170_s5 + $0x18] sm:$0xff] %v471_v28 }
 0x30b   : > { %v461_v29 = vpop.permute.xlu2 %460 }
 0x30c   : > { %v472_v30 = vmul.f32 %v461_v29, %v677_v10  ;;  %v473_v31 = vmul.f32 %v461_v29, %v679_v11 }
 0x30e   : > { %480 = vst [vmem:[%s170_s5 + $0x20] sm:$0xff] %v472_v30 }
 0x30f   : > { %481 = vst [vmem:[%s170_s5 + $0x28] sm:$0xff] %v473_v31 }
 0x314   : > { %v451_v32 = vpop.permute.xlu1 %450 }
 0x315   : > { %v468_v33 = vmul.f32 %v451_v32, %v673_v8  ;;  %v469_v34 = vmul.f32 %v451_v32, %v675_v9 }
 0x317   : > { %476 = vst [vmem:[%s170_s5] sm:$0xff] %v468_v33 }
 0x318   : > { %477 = vst [vmem:[%s170_s5 + $0x8] sm:$0xff] %v469_v34 }
 0x31c   : > { %v466_v35 = vpop.permute.xlu1 %465 }
 0x31d   : > { %v474_v1 = vmul.f32 %v466_v35, %v665_v4  ;;  %v475_v2 = vmul.f32 %v466_v35, %v667_v5 }
 0x31f   : > { %482 = vst [vmem:[%s170_s5 + $0x30] sm:$0xff] %v474_v1 }
 0x320   : > { %483 = vst [vmem:[%s170_s5 + $0x38] sm:$0xff] %v475_v2 }
 0x321 PF: > { %s13_s12 = sadd.s32 1, %s612_s12  }
 0x322   : > { %p10_p4 = scmp.ge.s32.totalorder %s13_s12, 4  }
 0x324   :  { %12 = sbr.rel (!%p10_p4) target bundleno = 1 (0x1), region = 62 }

</bundles_post_ra>
